<compile_context>
chip_gen: v7x
topology: tpu7x:2x2x1
jax: 0.10.0
libtpu: 0.0.40
codegen_flags: <defaults>
</compile_context>

<pallas_src>
import jax
import jax.numpy as jnp
from jax.experimental import pallas as pl
from jax.experimental.pallas import tpu as pltpu


def planar_flow_kernel(scal_ref, z_ref, wsel_ref, uexp_ref, fz_ref, logdet_ref):
    """One batch tile of the planar-flow forward pass (lane-folded layout).

    scal_ref   : (2,)    SMEM  -> [b, dot(w, uhat)]  (float32)
    z_ref      : (TR, L) VMEM  -> F original rows packed per folded row (L = F*D)
    wsel_ref   : (L, F)  VMEM  -> block-diagonal matrix carrying w (z @ wsel = per-row z.w)
    uexp_ref   : (F, L)  VMEM  -> block-diagonal matrix carrying uhat (t @ uexp broadcasts)
    fz_ref     : (TR, L) VMEM out (same dtype as z)
    logdet_ref : (TR, F) VMEM out, float32
    """
    b = scal_ref[0]
    w_dot_uhat = scal_ref[1]

    # z stays in its I/O dtype (f32 or bf16); the MXU accumulates in f32 either way.
    z = z_ref[...]                                                    # (TR, L)

    # zwb[r, j] = dot(z_orig_row(r, j), w) + b   via block-diagonal MXU matmul.
    zwb = jnp.dot(z, wsel_ref[...], preferred_element_type=jnp.float32) + b   # (TR, F)
    t = jnp.tanh(zwb)                                                 # (TR, F), f32

    # f_z = z + tanh(zwb) * uhat  (broadcast back to lanes via the block-diagonal matmul
    # that already carries uhat, saving an extra (TR, L) VPU multiply).
    delta = jnp.dot(t.astype(uexp_ref.dtype), uexp_ref[...],
                    preferred_element_type=jnp.float32)               # (TR, L), f32
    fz_ref[...] = (z + delta).astype(fz_ref.dtype)

    # logdet = log(|1 + (1 - tanh^2) * (w . uhat)| + 1e-8)
    psi_u = (1.0 - t * t) * w_dot_uhat                                # (TR, F)
    logdet_ref[...] = jnp.log(jnp.abs(1.0 + psi_u) + 1e-8).astype(logdet_ref.dtype)


def planar_flow(z, u, w, b, *, target_tile_rows=4096):
    """Planar flow forward: returns (f_z, logdet_jacobian).

    z : (B, D) float32 or bfloat16   u, w : (D,) float   b : (1,) float
    """
    B, D = z.shape
    out_dtype = z.dtype

    # ---- grid-invariant parameter math, hoisted out of the kernel -------------
    uf = u.astype(jnp.float32)
    wf = w.astype(jnp.float32)
    bf = jnp.asarray(b, jnp.float32).reshape(-1)[0]

    uw = jnp.sum(uf * wf)
    muw = -1.0 + jax.nn.softplus(uw)
    uhat = uf + (muw - uw) * wf / jnp.sum(wf * wf)                    # (D,)
    w_dot_uhat = jnp.sum(wf * uhat)
    scalars = jnp.stack([bf, w_dot_uhat]).astype(jnp.float32)         # (2,) -> SMEM

    # ---- lane folding: pack F original rows per 128-lane vreg row --------------
    if D <= 128 and 128 % D == 0:
        F = 128 // D
    else:
        F = 1
    L = F * D

    # Pad only to a multiple of F (<= F-1 rows).  No padding to tile multiples:
    # the last grid block may be partial (OOB reads are garbage but sliced off,
    # OOB output writes are masked by Pallas).
    R_pad = pl.cdiv(B, F)                      # folded rows
    B_pad = R_pad * F
    zp = z if B_pad == B else jnp.pad(z, ((0, B_pad - B), (0, 0)))
    z_folded = zp.reshape(R_pad, L)

    # ---- tile selection --------------------------------------------------------
    # Big tiles amortize the ~0.35 us per-grid-step overhead; keep >= 2 tiles when the
    # batch is large so the "parallel" axis shards across both v7x TensorCores.
    if R_pad <= 512:
        TR = R_pad                             # single tile; block dims equal full dims
    else:
        TR = min(int(target_tile_rows), pl.cdiv(R_pad, 2))
        TR = ((TR + 7) // 8) * 8               # sublane-aligned tile height
    n_tiles = pl.cdiv(R_pad, TR)

    # Block-diagonal helper matrices (built once, tiny).  Kept in z's dtype so the MXU
    # sees matching operands (bf16 x bf16 or f32 x f32) with f32 accumulation.
    mxu_dtype = jnp.bfloat16 if out_dtype == jnp.bfloat16 else jnp.float32
    seg = jnp.arange(L) // D                                          # segment id per lane
    onehot = jax.nn.one_hot(seg, F, dtype=jnp.float32)                # (L, F)
    w_sel = (onehot * jnp.tile(wf, F)[:, None]).astype(mxu_dtype)     # (L, F)
    u_exp = (onehot.T * jnp.tile(uhat, F)[None, :]).astype(mxu_dtype) # (F, L)

    fz_folded, logdet_folded = pl.pallas_call(
        planar_flow_kernel,
        out_shape=(
            jax.ShapeDtypeStruct((R_pad, L), out_dtype),
            jax.ShapeDtypeStruct((R_pad, F), jnp.float32),            # logdet kept f32
        ),
        grid_spec=pltpu.PrefetchScalarGridSpec(
            num_scalar_prefetch=0,
            grid=(n_tiles,),
            in_specs=[
                pl.BlockSpec(memory_space=pltpu.MemorySpace.SMEM),    # [b, w.uhat]
                pl.BlockSpec((TR, L), lambda i: (i, 0)),              # z (folded)
                pl.BlockSpec((L, F), lambda i: (0, 0)),               # w block-diag
                pl.BlockSpec((F, L), lambda i: (0, 0)),               # uhat block-diag
            ],
            out_specs=[
                pl.BlockSpec((TR, L), lambda i: (i, 0)),              # f_z (folded)
                pl.BlockSpec((TR, F), lambda i: (i, 0)),              # logdet (folded)
            ],
        ),
        compiler_params=pltpu.CompilerParams(
            dimension_semantics=("parallel",),                        # megacore on v7x
            vmem_limit_bytes=48 * 1024 * 1024,                        # headroom for big tiles
        ),
    )(scalars, z_folded, w_sel, u_exp)

    f_z = fz_folded.reshape(B_pad, D)[:B]
    logdet = logdet_folded.reshape(B_pad)[:B]
    return f_z, logdet


def planar_flow_ref(z, u, w, b):
    """Pure-JAX reference matching the PyTorch module semantics."""
    z = z.astype(jnp.float32)
    u = u.astype(jnp.float32)
    w = w.astype(jnp.float32)
    uw = jnp.sum(u * w)
    muw = -1.0 + jax.nn.softplus(uw)
    uhat = u + (muw - uw) * w / jnp.sum(w * w)
    zwb = jnp.sum(z * w[None, :], axis=-1) + b[0]
    t = jnp.tanh(zwb)
    f_z = z + uhat[None, :] * t[:, None]
    psi_u = (1.0 - t * t) * jnp.sum(w * uhat)
    logdet = jnp.log(jnp.abs(1.0 + psi_u) + 1e-8)
    return f_z, logdet


if __name__ == "__main__":
    key = jax.random.PRNGKey(0)
    k_u, k_w, k_z1, k_z2, k_z3 = jax.random.split(key, 5)

    D = 32  # in_features

    # Deterministic parameters mirroring the module __init__: u,w ~ randn(D), b = ones(1)
    u = jax.random.normal(k_u, (D,), dtype=jnp.float32)
    w = jax.random.normal(k_w, (D,), dtype=jnp.float32)
    b = jnp.ones((1,), dtype=jnp.float32)

    # --- small case (module-sized demo): batch=8 ---
    z_small = jax.random.normal(k_z1, (8, D), dtype=jnp.float32)
    f_z, logdet = planar_flow(z_small, u, w, b)
    f_z = jax.block_until_ready(f_z)
    logdet = jax.block_until_ready(logdet)

    f_z_ref, logdet_ref = planar_flow_ref(z_small, u, w, b)
    assert f_z.shape == (8, D) and logdet.shape == (8,)
    assert jnp.allclose(f_z, f_z_ref, atol=1e-4, rtol=1e-4)
    assert jnp.allclose(logdet, logdet_ref, atol=1e-3, rtol=1e-3)

    # --- batch not a multiple of the lane fold F: exercises the tiny pad-to-F path ---
    z_mid = jax.random.normal(k_z3, (10, D), dtype=jnp.float32)
    f_zm, logdetm = planar_flow(z_mid, u, w, b)
    f_zm = jax.block_until_ready(f_zm)
    logdetm = jax.block_until_ready(logdetm)
    f_zm_ref, logdetm_ref = planar_flow_ref(z_mid, u, w, b)
    assert f_zm.shape == (10, D) and logdetm.shape == (10,)
    assert jnp.allclose(f_zm, f_zm_ref, atol=1e-4, rtol=1e-4)
    assert jnp.allclose(logdetm, logdetm_ref, atol=1e-3, rtol=1e-3)

    # --- larger ragged case: multi-step pipelined grid with a partial last tile ---
    z_big = jax.random.normal(k_z2, (4100, D), dtype=jnp.float32)
    f_z2, logdet2 = planar_flow(z_big, u, w, b)
    f_z2 = jax.block_until_ready(f_z2)
    logdet2 = jax.block_until_ready(logdet2)

    f_z2_ref, logdet2_ref = planar_flow_ref(z_big, u, w, b)
    assert f_z2.shape == (4100, D) and logdet2.shape == (4100,)
    assert jnp.allclose(f_z2, f_z2_ref, atol=1e-4, rtol=1e-4)
    assert jnp.allclose(logdet2, logdet2_ref, atol=1e-3, rtol=1e-3)

    print("KERNEL_OK")
</pallas_src>

<mosaic_0001>
module attributes {stable_mosaic.version = 11 : i64} {
  func.func @planar_flow_kernel(%arg0: i32, %arg1: memref<2xf32, #tpu.memory_space<smem>>, %arg2: memref<2x128xf32, #tpu.memory_space<vmem>>, %arg3: memref<128x4xf32, #tpu.memory_space<vmem>>, %arg4: memref<4x128xf32, #tpu.memory_space<vmem>>, %arg5: memref<2x128xf32, #tpu.memory_space<vmem>>, %arg6: memref<2x4xf32, #tpu.memory_space<vmem>>) attributes {dimension_semantics = [#tpu.dimension_semantics<parallel>], iteration_bounds = array<i64: 1>, scalar_prefetch = 0 : i64, scratch_operands = 0 : i64, tpu.core_type = #tpu.core_type<tc>, window_params = [{transform_indices = @transform_0, window_bounds = array<i64: 2>}, {transform_indices = @transform_1, window_bounds = array<i64: 2, 128>}, {pipeline_mode = #tpu.pipeline_mode<synchronous>, transform_indices = @transform_2, window_bounds = array<i64: 128, 4>}, {pipeline_mode = #tpu.pipeline_mode<synchronous>, transform_indices = @transform_3, window_bounds = array<i64: 4, 128>}, {transform_indices = @transform_4, window_bounds = array<i64: 2, 128>}, {transform_indices = @transform_5, window_bounds = array<i64: 2, 4>}]} {
    %c0 = arith.constant 0 : index
    %0 = memref.load %arg1[%c0] : memref<2xf32, #tpu.memory_space<smem>>
    %c1 = arith.constant 1 : index
    %1 = memref.load %arg1[%c1] : memref<2xf32, #tpu.memory_space<smem>>
    %c0_0 = arith.constant 0 : index
    %c0_1 = arith.constant 0 : index
    %2 = vector.load %arg2[%c0_0, %c0_1] : memref<2x128xf32, #tpu.memory_space<vmem>>, vector<2x128xf32>
    %c0_2 = arith.constant 0 : index
    %c0_3 = arith.constant 0 : index
    %3 = vector.load %arg3[%c0_2, %c0_3] : memref<128x4xf32, #tpu.memory_space<vmem>>, vector<128x4xf32>
    %cst = arith.constant dense<0.000000e+00> : vector<2x4xf32>
    %4 = tpu.matmul %2, %3, %cst {dimension_numbers = #tpu.dot_dimension_numbers<[1], [0], [0], [1], [0, 0, 1, 1], [], []>} : vector<2x128xf32>, vector<128x4xf32>, vector<2x4xf32> -> vector<2x4xf32>
    %5 = vector.broadcast %0 : f32 to vector<2x4xf32>
    %6 = arith.addf %4, %5 : vector<2x4xf32>
    %7 = math.tanh %6 : vector<2x4xf32>
    %c0_4 = arith.constant 0 : index
    %c0_5 = arith.constant 0 : index
    %8 = vector.load %arg4[%c0_4, %c0_5] : memref<4x128xf32, #tpu.memory_space<vmem>>, vector<4x128xf32>
    %cst_6 = arith.constant dense<0.000000e+00> : vector<2x128xf32>
    %9 = tpu.matmul %7, %8, %cst_6 {dimension_numbers = #tpu.dot_dimension_numbers<[1], [0], [0], [1], [0, 0, 1, 1], [], []>} : vector<2x4xf32>, vector<4x128xf32>, vector<2x128xf32> -> vector<2x128xf32>
    %10 = arith.addf %2, %9 : vector<2x128xf32>
    %c0_7 = arith.constant 0 : index
    %c0_8 = arith.constant 0 : index
    %11 = vector.load %arg5[%c0_7, %c0_8] : memref<2x128xf32, #tpu.memory_space<vmem>>, vector<2x128xf32>
    tpu.vector_store %arg5[%c0_7, %c0_8], %10 {strides = array<i32>} : memref<2x128xf32, #tpu.memory_space<vmem>>, vector<2x128xf32>,
    %12 = arith.mulf %7, %7 : vector<2x4xf32>
    %cst_9 = arith.constant 1.000000e+00 : f32
    %13 = vector.broadcast %cst_9 : f32 to vector<2x4xf32>
    %14 = arith.subf %13, %12 : vector<2x4xf32>
    %15 = vector.broadcast %1 : f32 to vector<2x4xf32>
    %16 = arith.mulf %14, %15 : vector<2x4xf32>
    %cst_10 = arith.constant 1.000000e+00 : f32
    %17 = vector.broadcast %cst_10 : f32 to vector<2x4xf32>
    %18 = arith.addf %17, %16 : vector<2x4xf32>
    %19 = math.absf %18 : vector<2x4xf32>
    %cst_11 = arith.constant 9.99999993E-9 : f32
    %20 = vector.broadcast %cst_11 : f32 to vector<2x4xf32>
    %21 = arith.addf %19, %20 : vector<2x4xf32>
    %22 = math.log %21 : vector<2x4xf32>
    %c0_12 = arith.constant 0 : index
    %c0_13 = arith.constant 0 : index
    %23 = vector.load %arg6[%c0_12, %c0_13] : memref<2x4xf32, #tpu.memory_space<vmem>>, vector<2x4xf32>
    tpu.vector_store %arg6[%c0_12, %c0_13], %22 {strides = array<i32>} : memref<2x4xf32, #tpu.memory_space<vmem>>, vector<2x4xf32>,
    return
  }
  func.func @transform_0(%arg0: i32) -> i32 {
    %c0_i32 = arith.constant 0 : i32
    %c0_i32_0 = arith.constant 0 : i32
    return %c0_i32 : i32
  }
  func.func @transform_1(%arg0: i32) -> (i32, i32) {
    %c0_i32 = arith.constant 0 : i32
    %c0_i32_0 = arith.constant 0 : i32
    return %arg0, %c0_i32 : i32, i32
  }
  func.func @transform_2(%arg0: i32) -> (i32, i32) {
    %c0_i32 = arith.constant 0 : i32
    %c0_i32_0 = arith.constant 0 : i32
    %c0_i32_1 = arith.constant 0 : i32
    return %c0_i32, %c0_i32_0 : i32, i32
  }
  func.func @transform_3(%arg0: i32) -> (i32, i32) {
    %c0_i32 = arith.constant 0 : i32
    %c0_i32_0 = arith.constant 0 : i32
    %c0_i32_1 = arith.constant 0 : i32
    return %c0_i32, %c0_i32_0 : i32, i32
  }
  func.func @transform_4(%arg0: i32) -> (i32, i32) {
    %c0_i32 = arith.constant 0 : i32
    %c0_i32_0 = arith.constant 0 : i32
    return %arg0, %c0_i32 : i32, i32
  }
  func.func @transform_5(%arg0: i32) -> (i32, i32) {
    %c0_i32 = arith.constant 0 : i32
    %c0_i32_0 = arith.constant 0 : i32
    return %arg0, %c0_i32 : i32, i32
  }
}

</mosaic_0001>

<bundles_post_ra>
// kernel: tpu_custom_call.1
= control target key start
LH: loop header
LB: loop body
LE: loop exit
PB: predicated region body
PF: predicated region fallthrough
CT: control target
= control target key end

     0   :  { %11 = vsyncpa [#allocation4], 0  ;;  %s521_s0 = inlined_call_operand.vmem [shape: f32[2], index: 0, kind: input, shape index: {}]   ;;  %s522_s1 = inlined_call_operand.vmem [shape: f32[2,128], index: 1, kind: input, shape index: {}]   ;;  %s523_s2 = inlined_call_operand.vmem [shape: f32[128,4], index: 2, kind: input, shape index: {}]   ;;  %s524_s3 = inlined_call_operand.vmem [shape: f32[4,128], index: 3, kind: input, shape index: {}]   ;;  %s525_s4 = inlined_call_operand.hbm [shape: f32[2,128], index: 4, kind: output, shape index: {0}]   ;;  %s526_s5 = inlined_call_operand.hbm [shape: f32[2,4], index: 5, kind: output, shape index: {1}]  }
   0x1   :  { %12 = vsyncpa [#allocation3], 0 }
   0x2   :  { %13 = vsyncpa [#allocation7], 0  ;;  %s20_s20 = sshll.u32 %s521_s0, 4  ;;  %s21_s20 = int_to_ptr.vmem [resolvable:$true] %s20_s20 }
   0x3   :  { %s342_s21 = scalar_lea.vmem %s21_s20, 16  ;;  %p347_p1 = scmp.lt.s32.totalorder %s21_s20, %s21_s20 }
   0x4   :  { %p343_p0 = scmp.ne.s32.totalorder %s21_s20, %s342_s21  ;;  %p348_p2 = scmp.lt.s32.totalorder %s342_s21, %s342_s21 }
   0x6   :  { %p349_p3 = por %p348_p2, %p347_p1 }
   0x8   :  { %p350_p4 = pnand %p349_p3, %p343_p0 }
   0xa   :  { %353 = shalt.err (!%p350_p4)
}
   0xb   :  { %s404_s22 = smov [#allocation2]  }
   0xc   :  { %23 = dma.vmem_to_smem %s21_s20, 16, %s404_s22, [#allocation4]  }
   0xd   :  { %398 = dma.done.wait [#allocation4], 16  }
   0xe   :  { %399 = vsyncadd [#allocation4], 4294967280 }
   0xf   :  { %33 = sfence }
  0x10   :  { %v37_v0 = vld [vmem:[%s523_s2] sm:$0xff]  ;;  %v38_v1 = vld [vmem:[%s523_s2 + $0x8] sm:$0xff]  ;;  %v39_v2 = vld [vmem:[%s523_s2 + $0x10] sm:$0xff]  ;;  %v405_v3 = vmov 0.0|0.0   ;;  %vm406_vm0 = vmmov 0   ;;  %v407_v6 = vmov 0.0  }
  0x11   :  { %308 = vmatprep.subr.bf16.mxu0 %v405_v3  ;;  %v309_v4 = vpack.c.bf16 %v38_v1, %v37_v0  ;;  %v40_v5 = vld [vmem:[%s523_s2 + $0x18] sm:$0xff]  ;;  %300 = vmatprep.mubr.msk.f32.mxu0 %vm406_vm0, %v407_v6  ;;  %v41_v8 = vld [vmem:[%s523_s2 + $0x20] sm:$0xff]  ;;  %v42_v9 = vld [vmem:[%s523_s2 + $0x28] sm:$0xff]  ;;  %vm130_vm1 = vcmask 1043456   ;;  %s34_s7 = sld [smem:[#allocation2]]  ;;  %vm126_vm2 = vcmask 31744  }
  0x12   :  { %303 = vmatprep.subr.mxu1 %v407_v6  ;;  %305 = vmatprep.mubr.msk.f32.mxu1 %vm406_vm0, %v407_v6  ;;  %v312_v7 = vpack.c.bf16 %v40_v5, %v39_v2  ;;  %v315_v10 = vpack.c.bf16 %v42_v9, %v41_v8  ;;  %v43_v11 = vld [vmem:[%s523_s2 + $0x30] sm:$0xff]  ;;  %v44_v12 = vld [vmem:[%s523_s2 + $0x38] sm:$0xff]  ;;  %v45_v14 = vld [vmem:[%s523_s2 + $0x40] sm:$0xff]  ;;  %vm215_vm3 = vcmask 25600  }
  0x13   :  { %310 = vmatpush3.bf16.msra.mxu0 %v309_v4  ;;  %v318_v13 = vpack.c.bf16 %v44_v12, %v43_v11  ;;  %v46_v15 = vld [vmem:[%s523_s2 + $0x48] sm:$0xff]  ;;  %v47_v17 = vld [vmem:[%s523_s2 + $0x50] sm:$0xff]  ;;  %v48_v18 = vld [vmem:[%s523_s2 + $0x58] sm:$0xff] }
  0x14   :  { %311 = vmatprep.subr.bf16.mxu0 %v405_v3  ;;  %v321_v16 = vpack.c.bf16 %v46_v15, %v45_v14  ;;  %v324_v19 = vpack.c.bf16 %v48_v18, %v47_v17  ;;  %v49_v20 = vld [vmem:[%s523_s2 + $0x60] sm:$0xff]  ;;  %v50_v21 = vld [vmem:[%s523_s2 + $0x68] sm:$0xff]  ;;  %v51_v23 = vld [vmem:[%s523_s2 + $0x70] sm:$0xff] }
  0x15   :  { %v327_v22 = vpack.c.bf16 %v50_v21, %v49_v20  ;;  %v52_v24 = vld [vmem:[%s523_s2 + $0x78] sm:$0xff]  ;;  %v36_v26 = vld [vmem:[%s522_s1] sm:$0x3]  ;;  %s246_s2 = sld [smem:[#allocation2 + $0x1]]  ;;  %s408_s1 = smov [#allocation6]  }
  0x16   :  { %v330_v25 = vpack.c.bf16 %v52_v24, %v51_v23  ;;  %v125_v27 = vld [vmem:[%s524_s3] sm:$0xf]  ;;  %s233_s3 = sshll.u32 %s408_s1, 4  ;;  %s234_s3 = int_to_ptr.vmem [resolvable:$true] %s233_s3 }
  0x17   :  { %313 = vmatpush3.bf16.msra.mxu0 %v312_v7  ;;  %304 = vmatpush3.msk.msra.mxu1 %vm130_vm1, %v125_v27  ;;  %v53_v28 = vstv %s34_s7  ;;  %s354_s8 = scalar_lea.vmem %s234_s3, 32  ;;  %p359_p6 = scmp.lt.s32.totalorder %s234_s3, %s234_s3 }
  0x18   :  { %314 = vmatprep.subr.bf16.mxu0 %v405_v3  ;;  %p355_p5 = scmp.ne.s32.totalorder %s234_s3, %s354_s8  ;;  %p360_p7 = scmp.lt.s32.totalorder %s354_s8, %s354_s8 }
  0x1a   :  { %p361_p8 = por %p360_p7, %p359_p6 }
  0x1b   :  { %316 = vmatpush3.bf16.msra.mxu0 %v315_v10  ;;  %v208_v34 = vstv %s246_s2 }
  0x1c   :  { %317 = vmatprep.subr.bf16.mxu0 %v405_v3  ;;  %p362_p9 = pnand %p361_p8, %p355_p5 }
  0x1f   :  { %319 = vmatpush3.bf16.msra.mxu0 %v318_v13 }
  0x20   :  { %320 = vmatprep.subr.bf16.mxu0 %v405_v3 }
  0x23   :  { %322 = vmatpush3.bf16.msra.mxu0 %v321_v16 }
  0x24   :  { %323 = vmatprep.subr.bf16.mxu0 %v405_v3 }
  0x27   :  { %325 = vmatpush3.bf16.msra.mxu0 %v324_v19 }
  0x28   :  { %326 = vmatprep.subr.bf16.mxu0 %v405_v3 }
  0x2b   :  { %328 = vmatpush3.bf16.msra.mxu0 %v327_v22 }
  0x2c   :  { %329 = vmatprep.subr.bf16.mxu0 %v405_v3 }
  0x2f   :  { %331 = vmatpush3.bf16.msra.mxu0 %v330_v25 }
  0x32   :  { %301 = vmatmul.mubr.f32.vlgmr.msra.gmra.mrb[0].mxu0 %v36_v26 }
 0x105   :  { %v120_v29 = vpop.f32.mrb[0].mxu0 }
 0x106   :  { %v121_v30 = vadd.f32 %v120_v29, %v53_v28  ;;  %v302_v31 = vpop.f32.mrb[1].mxu0 }
 0x108   :  { %338 = vtanh.f32 %v121_v30 }
 0x112   :  { %v339_v32 = vpop.eup %338 }
 0x113   :  { %306 = vmatmul.mubr.msk.f32.vlgmr.msra.gmra.mrb[0].mxu1 %vm126_vm2, %v339_v32  ;;  %v206_v33 = vmul.f32 %v339_v32, %v339_v32 }
 0x115   :  { %v207_v35 = vsub.f32 1.0, %v206_v33 }
 0x117   :  { %v209_v36 = vmul.f32 %v208_v34, %v207_v35 }
 0x119   :  { %v210_v37 = vadd.f32 1.0, %v209_v36 }
 0x11b   :  { %v211_v38 = vand.u32 2147483647, %v210_v37 }
 0x11d   :  { %v212_v39 = vadd.f32 1e-08, %v211_v38 }
 0x11f   :  { %340 = vlog2.f32 %v212_v39 }
 0x129   :  { %v341_v40 = vpop.eup %340 }
 0x12a   :  { %v214_v41 = vmul.f32 0.6931472, %v341_v40 }
 0x12c   :  { %216 = vst.msk [vmem:[#allocation6] sm:$0x3] %vm215_vm3, %v214_v41 }
 0x12d   :  { %365 = shalt.err (!%p362_p9)
}
 0x12e   :  { %s366_s11 = scalar_lea.hbm %s526_s5, 32 }
 0x12f   :  { %p367_p10 = scmp.ne.s32.totalorder %s526_s5, %s366_s11  ;;  %p370_p11 = scmp.lt.u32.totalorder %s366_s11, %s526_s5 }
 0x131   :  { %p372_p12 = pnand %p370_p11, %p367_p10 }
 0x133   :  { %375 = shalt.err (!%p372_p12)
}
 0x134   :  { %236 = dma.vmem_to_hbm [thread:$0]  %s234_s3, 32, %s526_s5, [#allocation7]  }
 0x135   :  { %s409_s18 = smov [#allocation5]  }
 0x136   :  { %s223_s19 = sshll.u32 %s409_s18, 4  ;;  %s224_s19 = int_to_ptr.vmem [resolvable:$true] %s223_s19 }
 0x137   :  { %s376_s20 = scalar_lea.vmem %s224_s19, 32  ;;  %p381_p0 = scmp.lt.s32.totalorder %s224_s19, %s224_s19 }
 0x138   :  { %p377_p13 = scmp.ne.s32.totalorder %s224_s19, %s376_s20  ;;  %p382_p1 = scmp.lt.s32.totalorder %s376_s20, %s376_s20 }
 0x13a   :  { %p383_p2 = por %p382_p1, %p381_p0 }
 0x13c   :  { %p384_p3 = pnand %p383_p2, %p377_p13 }
 0x1e6   :  { %v200_v42 = vpop.f32.mrb[0].mxu1 }
 0x1e7   :  { %v204_v43 = vadd.f32 %v200_v42, %v36_v26  ;;  %v307_v44 = vpop.f32.mrb[1].mxu1 }
 0x1e9   :  { %205 = vst [vmem:[#allocation5] sm:$0x3] %v204_v43 }
 0x1ea   :  { %387 = shalt.err (!%p384_p3)
}
 0x1eb   :  { %s388_s23 = scalar_lea.hbm %s525_s4, 32 }
 0x1ec   :  { %p389_p4 = scmp.ne.s32.totalorder %s525_s4, %s388_s23  ;;  %p392_p5 = scmp.lt.u32.totalorder %s388_s23, %s525_s4 }
 0x1ee   :  { %p394_p6 = pnand %p392_p5, %p389_p4 }
 0x1f0   :  { %397 = shalt.err (!%p394_p6)
}
 0x1f1   :  { %226 = dma.vmem_to_hbm [thread:$0]  %s224_s19, 32, %s525_s4, [#allocation3]  }
 0x1f2   :  { %400 = dma.done.wait [#allocation3], 32  }
 0x1f3   :  { %401 = vsyncadd [#allocation3], 4294967264 }
 0x1f4   :  { %402 = dma.done.wait [#allocation7], 32  }
 0x1f5   :  { %403 = vsyncadd [#allocation7], 4294967264 }
 0x1f6   :  { %243 = vsyncpa [#allocation3], 1 }
 0x1f7   :  { %244 = vsyncpa [#allocation7], 1 }
 0x1f8   :  { %245 = vsyncpa [#allocation4], 1 }

</bundles_post_ra>
